<compile_context>
chip_gen: v7x
topology: tpu7x:2x2x1
jax: 0.10.0
libtpu: 0.0.40
codegen_flags: <defaults>
</compile_context>

<pallas_src>
import jax
import jax.numpy as jnp
import numpy as np
from jax.experimental import pallas as pl
from jax.experimental.pallas import tpu as pltpu

_MiB = 1024 * 1024


def _round_up(x, m):
    return ((x + m - 1) // m) * m


def _make_attention_kernel(separate_values, has_mask):
    """Kernel variant: ctx is streamed over HBM once and reused when values is None."""

    def kernel(*refs):
        i = 0
        q = refs[i][...].astype(jnp.float32); i += 1          # (TB, D)
        c = refs[i][...].astype(jnp.float32); i += 1          # (TB, S, D)
        if separate_values:
            v = refs[i][...].astype(jnp.float32); i += 1      # (TB, S, Dv)
        else:
            v = c                                             # values defaults to ctx
        if has_mask:
            mask = refs[i][...]; i += 1                       # (TB, S) raw mask, f32
        alphas_ref, summary_ref, scores_ref = refs[i], refs[i + 1], refs[i + 2]

        # scores[b, s] = sum_d q[b, d] * ctx[b, s, d]
        # Per-batch matvec (M=1): VPU multiply + lane reduce, exact f32
        # (an MXU dot would silently truncate f32 operands to bf16).
        scores = jnp.sum(q[:, None, :] * c, axis=-1)           # (TB, S) f32

        if has_mask:
            # scores + log(mask), computed in-kernel (EUP slot has slack).
            # Guard the log so mask == 0 yields exactly -inf on every backend.
            is_zero = mask == 0.0
            bias = jnp.where(is_zero, -jnp.inf,
                             jnp.log(jnp.where(is_zero, 1.0, mask)))
            scores = scores + bias

        # numerically-stable softmax over the sequence axis (all f32).
        mx = jnp.max(scores, axis=-1, keepdims=True)
        e = jnp.exp(scores - mx)
        denom = jnp.sum(e, axis=-1, keepdims=True)
        alphas = e / denom          # exact divide (approx reciprocal broke 2e-3 fidelity)

        # summary[b, d] = sum_s alphas[b, s] * values[b, s, d]   (sublane reduce)
        summary = jnp.sum(alphas[:, :, None] * v, axis=1)       # (TB, Dv) f32

        alphas_ref[...] = alphas.astype(alphas_ref.dtype)
        summary_ref[...] = summary.astype(summary_ref.dtype)
        scores_ref[...] = scores.astype(scores_ref.dtype)

    return kernel


def _vmem_policy():
    """(budget_bytes, limit_bytes, min_grid_steps) for the current TPU generation."""
    cap = 64 * _MiB
    try:
        cap = int(getattr(pltpu.get_tpu_info(), "vmem_capacity_bytes", cap))
    except Exception:
        pass
    if cap >= 100 * _MiB:
        # v5e / v6e: 128 MiB VMEM, single TensorCore -> big tiles, no step clamp.
        return 48 * _MiB, 100 * _MiB, 1
    # v7x-like: 64 MiB / TC, 2 TCs -> keep >=4 grid steps (2 per core) so
    # BlockSpec double-buffering overlaps DMA with compute on both cores.
    return 20 * _MiB, 48 * _MiB, 4


def _choose_batch_tile(B, per_batch_bytes, budget_bytes, min_grid_steps):
    """Pick TB (batches per grid step) and the padded batch extent."""
    tb = max(1, int(budget_bytes) // max(1, int(per_batch_bytes)))
    if min_grid_steps > 1 and B >= 8 * min_grid_steps:
        tb = min(tb, -(-B // min_grid_steps))
    if tb >= B:
        return B, B                      # single full-extent tile
    tb = max(8, (tb // 8) * 8)           # sublane-dense row tiles (multiple of 8)
    if tb >= B:
        return B, B
    return tb, _round_up(B, tb)


def attention(qry, ctx, ctx_mask=None, values=None, *, stream_dtype=None,
              vmem_budget_bytes=None, vmem_limit_bytes=None):
    """Pallas port of Attention.forward.

    qry (B, D), ctx (B, S, D), ctx_mask (B, S) or None, values (B, S, Dv) or None.
    Returns (alphas (B, S), summary (B, Dv), scores (B, S)), all float32.
    stream_dtype=jnp.bfloat16 streams qry/ctx/values at half the HBM bytes
    (all softmax / contraction math stays f32).
    """
    B, S, D = ctx.shape
    separate_values = values is not None
    has_mask = ctx_mask is not None
    Dv = values.shape[2] if separate_values else D

    sdt = jnp.dtype(stream_dtype) if stream_dtype is not None else jnp.dtype(jnp.float32)

    operands = [qry.astype(sdt), ctx.astype(sdt)]
    pad_values = [0, 0]
    if separate_values:
        operands.append(values.astype(sdt)); pad_values.append(0)
    if has_mask:
        # raw mask streamed; log happens in-kernel. Padded rows get mask = 1 so
        # their (discarded) softmax stays finite.
        operands.append(ctx_mask.astype(jnp.float32)); pad_values.append(1)

    # ---- layout-aware VMEM accounting (blocks pad to (8,128) vreg tiles) ----
    es = sdt.itemsize
    sub = 8 * (4 // es)                     # second-minor multiple for packed dtypes
    ctx_pb = _round_up(S, sub) * _round_up(D, 128) * es
    val_pb = _round_up(S, sub) * _round_up(Dv, 128) * es
    qry_pb = _round_up(D, 128) * es
    mask_pb = _round_up(S, 128) * 4 if has_mask else 0
    out_pb = 2 * _round_up(S, 128) * 4 + _round_up(Dv, 128) * 4
    stream_pb = ctx_pb + (val_pb if separate_values else 0) + qry_pb + mask_pb
    # one f32 (S, max(D,Dv)) slab allowance for in-kernel upcast/broadcast
    # temporaries (the two contractions are not simultaneously live).
    temp_pb = _round_up(S, 8) * _round_up(max(D, Dv), 128) * 4
    per_batch = 2 * (stream_pb + out_pb) + temp_pb          # x2: double-buffered pipeline

    budget, limit, min_steps = _vmem_policy()
    if vmem_budget_bytes is not None:
        budget = vmem_budget_bytes
    if vmem_limit_bytes is not None:
        limit = vmem_limit_bytes
    TB, Bpad = _choose_batch_tile(B, per_batch, budget, min_steps)

    if Bpad != B:
        pad = Bpad - B
        operands = [jnp.pad(a, [(0, pad)] + [(0, 0)] * (a.ndim - 1), constant_values=pv)
                    for a, pv in zip(operands, pad_values)]

    in_specs = [pl.BlockSpec((TB, D), lambda b: (b, 0)),
                pl.BlockSpec((TB, S, D), lambda b: (b, 0, 0))]
    if separate_values:
        in_specs.append(pl.BlockSpec((TB, S, Dv), lambda b: (b, 0, 0)))
    if has_mask:
        in_specs.append(pl.BlockSpec((TB, S), lambda b: (b, 0)))

    # Lane-dense 2-D output slabs (no size-1 dims). Call sites get the best
    # store efficiency when S and Dv are multiples of 128.
    out_specs = [pl.BlockSpec((TB, S), lambda b: (b, 0)),    # alphas
                 pl.BlockSpec((TB, Dv), lambda b: (b, 0)),   # summary
                 pl.BlockSpec((TB, S), lambda b: (b, 0))]    # scores
    out_shape = (jax.ShapeDtypeStruct((Bpad, S), jnp.float32),
                 jax.ShapeDtypeStruct((Bpad, Dv), jnp.float32),
                 jax.ShapeDtypeStruct((Bpad, S), jnp.float32))

    out_bytes = (2 * Bpad * S + Bpad * Dv) * 4
    cost = pl.CostEstimate(
        flops=int(2 * B * S * (D + Dv)),
        transcendentals=int(B * S * (2 if has_mask else 1)),
        bytes_accessed=int(sum(a.size * a.dtype.itemsize for a in operands) + out_bytes))

    alphas, summary, scores = pl.pallas_call(
        _make_attention_kernel(separate_values, has_mask),
        out_shape=out_shape,
        grid_spec=pltpu.PrefetchScalarGridSpec(
            num_scalar_prefetch=0,
            grid=(Bpad // TB,),
            in_specs=in_specs,
            out_specs=out_specs),
        compiler_params=pltpu.CompilerParams(
            dimension_semantics=("parallel",),
            vmem_limit_bytes=limit),
        cost_estimate=cost,
    )(*operands)

    if Bpad != B:
        alphas, summary, scores = alphas[:B], summary[:B], scores[:B]
    return alphas, summary, scores


def _reference(qry, ctx, ctx_mask=None, values=None):
    # HIGHEST precision so the reference matmul stays exact f32 on real TPUs.
    scores = jnp.einsum('bd,bsd->bs', qry, ctx, precision=jax.lax.Precision.HIGHEST)
    if ctx_mask is not None:
        scores = scores + jnp.log(ctx_mask.astype(jnp.float32))
    alphas = jax.nn.softmax(scores, axis=-1)
    v = ctx if values is None else values
    summary = jnp.sum(v * alphas[:, :, None], axis=1)
    return alphas, summary, scores


if __name__ == "__main__":
    key = jax.random.PRNGKey(0)
    B, S, D = 2, 8, 32
    k1, k2, k3 = jax.random.split(key, 3)
    qry = jax.random.normal(k1, (B, D), dtype=jnp.float32)
    ctx = jax.random.normal(k2, (B, S, D), dtype=jnp.float32)
    vals = jax.random.normal(k3, (B, S, D), dtype=jnp.float32)
    # deterministic mask: batch 0 keeps 6 positions, batch 1 keeps all 8
    lens = jnp.array([6, 8], dtype=jnp.int32)
    ctx_mask = (jnp.arange(S)[None, :] < lens[:, None]).astype(jnp.float32)

    # (1) values-defaults-to-ctx fast path (single ctx stream) with a mask
    alphas, summary, scores = attention(qry, ctx, ctx_mask=ctx_mask)
    jax.block_until_ready((alphas, summary, scores))
    r_alphas, r_summary, r_scores = _reference(qry, ctx, ctx_mask=ctx_mask)
    assert np.allclose(np.asarray(alphas), np.asarray(r_alphas), atol=2e-3)
    assert np.allclose(np.asarray(summary), np.asarray(r_summary), atol=2e-3)
    fin = np.isfinite(np.asarray(r_scores))
    assert np.allclose(np.asarray(scores)[fin], np.asarray(r_scores)[fin], atol=1e-3)
    assert np.all(np.asarray(scores)[~fin] < -1e30)   # masked positions -> -inf

    # (2) explicit values, no mask (exercises the other kernel variant)
    alphas2, summary2, scores2 = attention(qry, ctx, values=vals)
    jax.block_until_ready((alphas2, summary2, scores2))
    r_alphas2, r_summary2, r_scores2 = _reference(qry, ctx, values=vals)
    assert np.allclose(np.asarray(alphas2), np.asarray(r_alphas2), atol=2e-3)
    assert np.allclose(np.asarray(summary2), np.asarray(r_summary2), atol=2e-3)
    assert np.allclose(np.asarray(scores2), np.asarray(r_scores2), atol=1e-3)

    # (3) bf16-streamed HBM fast path: kernel math stays f32, so it matches an
    #     f32 reference evaluated on the same bf16-rounded inputs.
    alphas3, summary3, scores3 = attention(qry, ctx, ctx_mask=ctx_mask,
                                           stream_dtype=jnp.bfloat16)
    jax.block_until_ready((alphas3, summary3, scores3))
    q_b = qry.astype(jnp.bfloat16).astype(jnp.float32)
    c_b = ctx.astype(jnp.bfloat16).astype(jnp.float32)
    r_alphas3, r_summary3, r_scores3 = _reference(q_b, c_b, ctx_mask=ctx_mask)
    assert np.allclose(np.asarray(alphas3), np.asarray(r_alphas3), atol=2e-3)
    assert np.allclose(np.asarray(summary3), np.asarray(r_summary3), atol=2e-3)
    fin3 = np.isfinite(np.asarray(r_scores3))
    assert np.allclose(np.asarray(scores3)[fin3], np.asarray(r_scores3)[fin3], atol=1e-3)

    print("KERNEL_OK")
</pallas_src>

<mosaic_0001>
module attributes {stable_mosaic.version = 11 : i64} {
  func.func @kernel(%arg0: i32, %arg1: memref<2x32xf32, #tpu.memory_space<vmem>>, %arg2: memref<2x8x32xf32, #tpu.memory_space<vmem>>, %arg3: memref<2x8xf32, #tpu.memory_space<vmem>>, %arg4: memref<2x8xf32, #tpu.memory_space<vmem>>, %arg5: memref<2x32xf32, #tpu.memory_space<vmem>>, %arg6: memref<2x8xf32, #tpu.memory_space<vmem>>) attributes {dimension_semantics = [#tpu.dimension_semantics<parallel>], iteration_bounds = array<i64: 1>, scalar_prefetch = 0 : i64, scratch_operands = 0 : i64, tpu.core_type = #tpu.core_type<tc>, window_params = [{transform_indices = @transform_0, window_bounds = array<i64: 2, 32>}, {transform_indices = @transform_1, window_bounds = array<i64: 2, 8, 32>}, {transform_indices = @transform_2, window_bounds = array<i64: 2, 8>}, {transform_indices = @transform_3, window_bounds = array<i64: 2, 8>}, {transform_indices = @transform_4, window_bounds = array<i64: 2, 32>}, {transform_indices = @transform_5, window_bounds = array<i64: 2, 8>}]} {
    %c0 = arith.constant 0 : index
    %c0_0 = arith.constant 0 : index
    %0 = vector.load %arg1[%c0, %c0_0] : memref<2x32xf32, #tpu.memory_space<vmem>>, vector<2x32xf32>
    %c0_1 = arith.constant 0 : index
    %c0_2 = arith.constant 0 : index
    %c0_3 = arith.constant 0 : index
    %1 = vector.load %arg2[%c0_1, %c0_2, %c0_3] : memref<2x8x32xf32, #tpu.memory_space<vmem>>, vector<2x8x32xf32>
    %c0_4 = arith.constant 0 : index
    %c0_5 = arith.constant 0 : index
    %2 = vector.load %arg3[%c0_4, %c0_5] : memref<2x8xf32, #tpu.memory_space<vmem>>, vector<2x8xf32>
    %3 = vector.shape_cast %0 : vector<2x32xf32> to vector<2x1x32xf32>
    %4 = vector.broadcast %3 : vector<2x1x32xf32> to vector<2x8x32xf32>
    %5 = arith.mulf %4, %1 : vector<2x8x32xf32>
    %cst = arith.constant dense<0.000000e+00> : vector<2x8xf32>
    %6 = vector.multi_reduction <add>, %5, %cst [2] : vector<2x8x32xf32> to vector<2x8xf32>
    %cst_6 = arith.constant 0.000000e+00 : f32
    %7 = vector.broadcast %cst_6 : f32 to vector<2x8xf32>
    %8 = arith.cmpf oeq, %2, %7 : vector<2x8xf32>
    %cst_7 = arith.constant 1.000000e+00 : f32
    %9 = vector.broadcast %cst_7 : f32 to vector<2x8xf32>
    %10 = arith.select %8, %9, %2 : vector<2x8xi1>, vector<2x8xf32>
    %11 = math.log %10 : vector<2x8xf32>
    %cst_8 = arith.constant 0xFF800000 : f32
    %12 = vector.broadcast %cst_8 : f32 to vector<2x8xf32>
    %13 = arith.select %8, %12, %11 : vector<2x8xi1>, vector<2x8xf32>
    %14 = arith.addf %6, %13 : vector<2x8xf32>
    %cst_9 = arith.constant dense<0xFF800000> : vector<2xf32>
    %15 = vector.multi_reduction <maximumf>, %14, %cst_9 [1] : vector<2x8xf32> to vector<2xf32>
    %16 = vector.shape_cast %15 : vector<2xf32> to vector<2x1xf32>
    %17 = vector.broadcast %16 : vector<2x1xf32> to vector<2x8xf32>
    %18 = arith.subf %14, %17 : vector<2x8xf32>
    %19 = math.exp %18 : vector<2x8xf32>
    %cst_10 = arith.constant dense<0.000000e+00> : vector<2xf32>
    %20 = vector.multi_reduction <add>, %19, %cst_10 [1] : vector<2x8xf32> to vector<2xf32>
    %21 = vector.shape_cast %20 : vector<2xf32> to vector<2x1xf32>
    %22 = vector.broadcast %21 : vector<2x1xf32> to vector<2x8xf32>
    %23 = arith.divf %19, %22 : vector<2x8xf32>
    %24 = vector.shape_cast %23 : vector<2x8xf32> to vector<2x8x1xf32>
    %25 = vector.broadcast %24 : vector<2x8x1xf32> to vector<2x8x32xf32>
    %26 = arith.mulf %25, %1 : vector<2x8x32xf32>
    %cst_11 = arith.constant dense<0.000000e+00> : vector<2x32xf32>
    %27 = vector.multi_reduction <add>, %26, %cst_11 [1] : vector<2x8x32xf32> to vector<2x32xf32>
    %c0_12 = arith.constant 0 : index
    %c0_13 = arith.constant 0 : index
    %28 = vector.load %arg4[%c0_12, %c0_13] : memref<2x8xf32, #tpu.memory_space<vmem>>, vector<2x8xf32>
    tpu.vector_store %arg4[%c0_12, %c0_13], %23 {strides = array<i32>} : memref<2x8xf32, #tpu.memory_space<vmem>>, vector<2x8xf32>,
    %c0_14 = arith.constant 0 : index
    %c0_15 = arith.constant 0 : index
    %29 = vector.load %arg5[%c0_14, %c0_15] : memref<2x32xf32, #tpu.memory_space<vmem>>, vector<2x32xf32>
    tpu.vector_store %arg5[%c0_14, %c0_15], %27 {strides = array<i32>} : memref<2x32xf32, #tpu.memory_space<vmem>>, vector<2x32xf32>,
    %c0_16 = arith.constant 0 : index
    %c0_17 = arith.constant 0 : index
    %30 = vector.load %arg6[%c0_16, %c0_17] : memref<2x8xf32, #tpu.memory_space<vmem>>, vector<2x8xf32>
    tpu.vector_store %arg6[%c0_16, %c0_17], %14 {strides = array<i32>} : memref<2x8xf32, #tpu.memory_space<vmem>>, vector<2x8xf32>,
    return
  }
  func.func @transform_0(%arg0: i32) -> (i32, i32) {
    %c0_i32 = arith.constant 0 : i32
    %c0_i32_0 = arith.constant 0 : i32
    return %arg0, %c0_i32 : i32, i32
  }
  func.func @transform_1(%arg0: i32) -> (i32, i32, i32) {
    %c0_i32 = arith.constant 0 : i32
    %c0_i32_0 = arith.constant 0 : i32
    %c0_i32_1 = arith.constant 0 : i32
    return %arg0, %c0_i32, %c0_i32_0 : i32, i32, i32
  }
  func.func @transform_2(%arg0: i32) -> (i32, i32) {
    %c0_i32 = arith.constant 0 : i32
    %c0_i32_0 = arith.constant 0 : i32
    return %arg0, %c0_i32 : i32, i32
  }
  func.func @transform_3(%arg0: i32) -> (i32, i32) {
    %c0_i32 = arith.constant 0 : i32
    %c0_i32_0 = arith.constant 0 : i32
    return %arg0, %c0_i32 : i32, i32
  }
  func.func @transform_4(%arg0: i32) -> (i32, i32) {
    %c0_i32 = arith.constant 0 : i32
    %c0_i32_0 = arith.constant 0 : i32
    return %arg0, %c0_i32 : i32, i32
  }
  func.func @transform_5(%arg0: i32) -> (i32, i32) {
    %c0_i32 = arith.constant 0 : i32
    %c0_i32_0 = arith.constant 0 : i32
    return %arg0, %c0_i32 : i32, i32
  }
}

</mosaic_0001>

<bundles_post_ra>
// kernel: tpu_custom_call.1
= control target key start
LH: loop header
LB: loop body
LE: loop exit
PB: predicated region body
PF: predicated region fallthrough
CT: control target
= control target key end

     0   :  { %11 = vsyncpa [#allocation3], 0  ;;  %s566_s0 = inlined_call_operand.hbm [shape: f32[2,32], index: 0, kind: input, shape index: {}]   ;;  %s567_s1 = inlined_call_operand.hbm [shape: f32[2,8,32], index: 1, kind: input, shape index: {}]   ;;  %s568_s2 = inlined_call_operand.vmem [shape: f32[2,8], index: 2, kind: input, shape index: {}]   ;;  %s569_s3 = inlined_call_operand.hbm [shape: f32[2,8], index: 3, kind: output, shape index: {0}]   ;;  %s570_s4 = inlined_call_operand.hbm [shape: f32[2,32], index: 4, kind: output, shape index: {1}]   ;;  %s571_s5 = inlined_call_operand.hbm [shape: f32[2,8], index: 5, kind: output, shape index: {2}]  }
   0x1   :  { %12 = vsyncpa [#allocation6], 0 }
   0x2   :  { %13 = vsyncpa [#allocation4], 0 }
   0x3   :  { %14 = vsyncpa [#allocation9], 0  ;;  %s420_s18 = smov [#allocation2]   ;;  %s421_s20 = smov [#allocation5]  }
   0x4   :  { %s21_s19 = sshll.u32 %s420_s18, 4  ;;  %s30_s21 = sshll.u32 %s421_s20, 4  ;;  %s22_s19 = int_to_ptr.vmem [resolvable:$true] %s21_s19  ;;  %s459_s21 = int_to_ptr.vmem [resolvable:$true] %s30_s21 }
   0x5   :  { %s302_s24 = scalar_lea.hbm %s566_s0, 32 }
   0x6   :  { %p303_p0 = scmp.ne.s32.totalorder %s566_s0, %s302_s24  ;;  %p306_p1 = scmp.lt.u32.totalorder %s302_s24, %s566_s0 }
   0x8   :  { %p308_p2 = pnand %p306_p1, %p303_p0 }
   0xa   :  { %311 = shalt.err (!%p308_p2)
}
   0xb   :  { %s312_s29 = scalar_lea.vmem %s22_s19, 32  ;;  %p317_p4 = scmp.lt.s32.totalorder %s22_s19, %s22_s19 }
   0xc   :  { %p313_p3 = scmp.ne.s32.totalorder %s22_s19, %s312_s29  ;;  %p318_p5 = scmp.lt.s32.totalorder %s312_s29, %s312_s29 }
   0xe   :  { %p319_p6 = por %p318_p5, %p317_p4 }
  0x10   :  { %p320_p7 = pnand %p319_p6, %p313_p3 }
  0x12   :  { %323 = shalt.err (!%p320_p7)
}
  0x13   :  { %24 = dma.hbm_to_vmem [thread:$0]  %s566_s0, 32, %s22_s19, [#allocation3]  }
  0x14   :  { %s324_s9 = scalar_lea.hbm %s567_s1, 256 }
  0x15   :  { %p325_p8 = scmp.ne.s32.totalorder %s567_s1, %s324_s9  ;;  %p328_p9 = scmp.lt.u32.totalorder %s324_s9, %s567_s1 }
  0x17   :  { %p330_p10 = pnand %p328_p9, %p325_p8 }
  0x19   :  { %333 = shalt.err (!%p330_p10)
}
  0x1a   :  { %s334_s14 = scalar_lea.vmem %s459_s21, 256  ;;  %p339_p12 = scmp.lt.s32.totalorder %s459_s21, %s459_s21 }
  0x1b   :  { %p335_p11 = scmp.ne.s32.totalorder %s459_s21, %s334_s14  ;;  %p340_p13 = scmp.lt.s32.totalorder %s334_s14, %s334_s14 }
  0x1d   :  { %p341_p0 = por %p340_p13, %p339_p12 }
  0x1f   :  { %p342_p1 = pnand %p341_p0, %p335_p11 }
  0x21   :  { %345 = shalt.err (!%p342_p1)
}
  0x22   :  { %s422_s0 = smov 128   ;;  %s423_s15 = smov 8  }
  0x23   :  { %36 = dma.hbm_to_vmem [thread:$0]  %s567_s1, 256, %s459_s21, [#allocation6], %s422_s0, %s422_s0, %s423_s15  }
  0x24   :  { %412 = dma.done.wait [#allocation3], 32  }
  0x25   :  { %413 = vsyncadd [#allocation3], 4294967264 }
  0x26   :  { %414 = dma.done.wait [#allocation6], 256  }
  0x27   :  { %415 = vsyncadd [#allocation6], 4294967040  ;;  %v61_v0 = vlaneseq  ;;  %v424_v1 = vmov 1966171168   ;;  %v48_v10 = vld [vmem:[%s568_s2] sm:$0x3] }
  0x28   :  { %v59_v2 = vunpack.c.l.s4 %v424_v1  ;;  %v280_v7 = vld.sshfl [vmem:[#allocation2] sm:$0x11 pattern:$0x75316420]  ;;  %v495_v11 = vld [vmem:[#allocation5] sm:$0xff]  ;;  %vm91_vm0 = vcmp.eq.f32.partialorder %v48_v10, 0.0 }
  0x29   :  { %v62_v3 = vshrl.u32 %v61_v0, 7  ;;  %v57_v9 = vcombine.high %v280_v7, %v280_v7  ;;  %v92_v14 = vsel %vm91_vm0, 1.0, %v48_v10  ;;  %vm84_vm1 = vcmask 261120   ;;  %v499_v15 = vld [vmem:[#allocation5 + $0x8] sm:$0xff]  ;;  %s426_s1 = smov [#allocation7]  }
  0x2a   :  { %v60_v4 = vunpack.c.0.s8 %v59_v2  ;;  %292 = vlog2.f32 %v92_v14  ;;  %v425_v27 = vmov 0   ;;  %v124_v28 = vand.u32 127, %v61_v0  ;;  %s243_s2 = sshll.u32 %s426_s1, 4  ;;  %s244_s2 = int_to_ptr.vmem [resolvable:$true] %s243_s2 }
  0x2b   :  { %v490_v6 = vsub.s32 0, %v62_v3  ;;  %v106_v23 = vsub.s32 1, %v62_v3  ;;  %290 = vset.pattern.permute.xlu0 %v425_v27  ;;  %291 = vset.pattern.permute.xlu1 %v425_v27  ;;  %vm133_vm2 = vcmask 1041409   ;;  %vm136_vm3 = vcmask 58368   ;;  %s346_s20 = scalar_lea.vmem %s244_s2, 32  ;;  %p351_p3 = scmp.lt.s32.totalorder %s244_s2, %s244_s2 }
  0x2c   :  { %v63_v5 = vsub.s32 %v60_v4, %v62_v3  ;;  %v508_v29 = vsub.s32 %v124_v28, %v62_v3  ;;  %p347_p2 = scmp.ne.s32.totalorder %s244_s2, %s346_s20  ;;  %p352_p4 = scmp.lt.s32.totalorder %s346_s20, %s346_s20 }
  0x2e   :  { %v64_v8 = vrot.slane %v280_v7, %v63_v5  ;;  %v71_v13 = vrot.slane %v57_v9, %v63_v5  ;;  %p353_p5 = por %p352_p4, %p351_p3 }
  0x30   :  { %v75_v12 = vrot.slane %v64_v8, %v490_v6  ;;  %v79_v17 = vrot.slane %v71_v13, %v490_v6  ;;  %p354_p6 = pnand %p353_p5, %p347_p2 }
  0x32   :  { %v82_v16 = vmul.f32 %v75_v12, %v495_v11  ;;  %v83_v19 = vmul.f32 %v79_v17, %v499_v15 }
  0x34   :  { %v85_v18 = vsel %vm84_vm1, %v82_v16, 0.0  ;;  %v88_v20 = vsel %vm84_vm1, %v83_v19, 0.0  ;;  %v293_v21 = vpop.eup %292 }
  0x35   :  { %86 = vadd.xlane.f32.xlu0 %v85_v18  ;;  %v94_v22 = vmul.f32 0.6931472, %v293_v21 }
  0x37   :  { %v95_v24 = vsel %vm91_vm0, -inf, %v94_v22 }
  0x38   :  { %v100_v25 = vrot.slane %v95_v24, %v490_v6  ;;  %v107_v26 = vrot.slane %v95_v24, %v106_v23 }
  0x39   :  { %89 = vadd.xlane.f32.xlu0 %v88_v20 }
  0x3a   :  { %102 = vbcast.lane.b32.xlu1 %v100_v25, 256 }
  0x3e   :  { %109 = vbcast.lane.b32.xlu1 %v107_v26, 256 }
  0xac   :  { %v103_v30 = vpop.permute.xlu1 %102 }
  0xb0   :  { %v110_v33 = vpop.permute.xlu1 %109 }
  0xc2   :  { %v87_v31 = vpop.xlane.xlu0 %86 }
  0xc3   :  { %v113_v32 = vadd.f32 %v103_v30, %v87_v31 }
  0xc5   :  { %118 = vperm.xlu0 %290, %v113_v32  }
  0xc6   :  { %v90_v34 = vpop.xlane.xlu0 %89 }
  0xc7   :  { %v114_v35 = vadd.f32 %v110_v33, %v90_v34 }
  0xc9   :  { %121 = vperm.xlu1 %291, %v114_v35  }
 0x144   :  { %v119_v36 = vpop.permute.xlu0 %118 }
 0x145   :  { %v128_v38 = vrot.slane %v119_v36, %v508_v29 }
 0x148   :  { %v122_v37 = vpop.permute.xlu1 %121 }
 0x149   :  { %v132_v39 = vrot.slane %v122_v37, %v508_v29 }
 0x14b   :  { %v134_v40 = vsel %vm133_vm2, %v132_v39, %v128_v38 }
 0x14c   :  { %v137_v41 = vsel %vm136_vm3, %v134_v40, -inf  ;;  %236 = vst.msk [vmem:[#allocation10] sm:$0x3] %vm136_vm3, %v134_v40 }
 0x14d   :  { %138 = vmax.xlane.f32.xlu1 %v137_v41 }
 0x1da   :  { %v139_v42 = vpop.xlane.xlu1 %138 }
 0x1db   :  { %v144_v43 = vrot.slane %v139_v42, %v490_v6  ;;  %v148_v44 = vrot.slane %v139_v42, %v106_v23 }
 0x1dd   :  { %v151_v45 = vsub.f32 %v113_v32, %v144_v43  ;;  %v152_v46 = vsub.f32 %v114_v35, %v148_v44 }
 0x1df   :  { %v153_v47 = vmul.f32 1.442695, %v151_v45  ;;  %v155_v48 = vmul.f32 1.442695, %v152_v46 }
 0x1e1   :  { %294 = vpow2.f32 %v153_v47 }
 0x1e2   :  { %296 = vpow2.f32 %v155_v48 }
 0x1eb   :  { %v295_v49 = vpop.eup %294 }
 0x1ec   :  { %v297_v50 = vpop.eup %296  ;;  %160 = vperm.xlu1 %291, %v295_v49  }
 0x1ed   :  { %163 = vperm.xlu0 %290, %v297_v50  }
 0x26b   :  { %v161_v51 = vpop.permute.xlu1 %160 }
 0x26c   :  { %v164_v52 = vpop.permute.xlu0 %163  ;;  %v168_v53 = vrot.slane %v161_v51, %v508_v29 }
 0x26d   :  { %v172_v54 = vrot.slane %v164_v52, %v508_v29 }
 0x26f   :  { %v173_v55 = vsel %vm133_vm2, %v172_v54, %v168_v53 }
 0x270   :  { %v175_v56 = vsel %vm136_vm3, %v173_v55, 0.0 }
 0x271   :  { %176 = vadd.xlane.f32.xlu0 %v175_v56 }
 0x2fe   :  { %v177_v57 = vpop.xlane.xlu0 %176 }
 0x2ff   :  { %v182_v58 = vrot.slane %v177_v57, %v490_v6  ;;  %v186_v59 = vrot.slane %v177_v57, %v106_v23 }
 0x301   :  { %298 = vrcp.f32 %v182_v58 }
 0x302   :  { %300 = vrcp.f32 %v186_v59 }
 0x30b   :  { %v299_v60 = vpop.eup %298 }
 0x30c   :  { %v190_v61 = vmul.f32 %v299_v60, %v295_v49  ;;  %v301_v62 = vpop.eup %300 }
 0x30d   :  { %v192_v63 = vmul.f32 %v301_v62, %v297_v50 }
 0x30e   :  { %195 = vperm.xlu1 %291, %v190_v61  }
 0x312   :  { %200 = vperm.xlu1 %291, %v192_v63  }
 0x38d   :  { %v196_v0 = vpop.permute.xlu1 %195 }
 0x38e   :  { %v203_v1 = vmul.f32 %v196_v0, %v495_v11  ;;  %v222_v5 = vrot.slane %v196_v0, %v508_v29 }
 0x390   :  { %v205_v2 = vsel %vm84_vm1, %v203_v1, 0.0 }
 0x391   :  { %v206_v3 = vrot.slane %v205_v2, 4  ;;  %v201_v4 = vpop.permute.xlu1 %200 }
 0x392   :  { %v204_v6 = vmul.f32 %v201_v4, %v499_v15  ;;  %v226_v7 = vrot.slane %v201_v4, %v508_v29 }
 0x393   :  { %v207_v8 = vadd.f32 %v206_v3, %v205_v2 }
 0x394   :  { %v212_v9 = vsel %vm84_vm1, %v204_v6, 0.0  ;;  %v227_v10 = vsel %vm133_vm2, %v226_v7, %v222_v5 }
 0x395   :  { %v208_v12 = vrot.slane %v207_v8, 2  ;;  %v213_v11 = vrot.slane %v212_v9, 4  ;;  %229 = vst.msk [vmem:[#allocation7] sm:$0x3] %vm136_vm3, %v227_v10 }
 0x396   :  { %357 = shalt.err (!%p354_p6)
}
 0x397   :  { %s358_s23 = scalar_lea.hbm %s569_s3, 32 }
 0x398   :  { %p359_p7 = scmp.ne.s32.totalorder %s569_s3, %s358_s23  ;;  %p362_p8 = scmp.lt.u32.totalorder %s358_s23, %s569_s3 }
 0x39a   :  { %p364_p9 = pnand %p362_p8, %p359_p7 }
 0x39c   :  { %367 = shalt.err (!%p364_p9)
}
 0x39d   :  { %246 = dma.vmem_to_hbm [thread:$0]  %s244_s2, 32, %s569_s3, [#allocation4]   ;;  %v209_v13 = vadd.f32 %v208_v12, %v207_v8  ;;  %v214_v14 = vadd.f32 %v213_v11, %v212_v9  ;;  %vm234_vm4 = vcmask 254976  }
 0x39e   :  { %s427_s30 = smov [#allocation8]   ;;  %s428_s7 = smov [#allocation10]  }
 0x39f   :  { %v215_v15 = vrot.slane %v214_v14, 2  ;;  %v210_v16 = vrot.slane %v209_v13, 1  ;;  %s253_s6 = sshll.u32 %s427_s30, 4  ;;  %s263_s8 = sshll.u32 %s428_s7, 4  ;;  %s254_s6 = int_to_ptr.vmem [resolvable:$true] %s253_s6  ;;  %s264_s8 = int_to_ptr.vmem [resolvable:$true] %s263_s8 }
 0x3a0   :  { %s368_s9 = scalar_lea.vmem %s254_s6, 32  ;;  %p373_p11 = scmp.lt.s32.totalorder %s254_s6, %s254_s6 }
 0x3a1   :  { %v216_v17 = vadd.f32 %v215_v15, %v214_v14  ;;  %v211_v20 = vadd.f32 %v210_v16, %v209_v13  ;;  %p369_p10 = scmp.ne.s32.totalorder %s254_s6, %s368_s9  ;;  %p374_p12 = scmp.lt.s32.totalorder %s368_s9, %s368_s9 }
 0x3a3   :  { %v217_v18 = vrot.slane %v216_v17, 1  ;;  %p375_p13 = por %p374_p12, %p373_p11 }
 0x3a5   :  { %v218_v19 = vadd.f32 %v217_v18, %v216_v17  ;;  %p376_p0 = pnand %p375_p13, %p369_p10 }
 0x3a7   :  { %v232_v21 = vsel %vm133_vm2, %v218_v19, %v211_v20 }
 0x3a8   :  { %235 = vst.msk [vmem:[#allocation8] sm:$0x3] %vm234_vm4, %v232_v21 }
 0x3a9   :  { %379 = shalt.err (!%p376_p0)
}
 0x3aa   :  { %s380_s11 = scalar_lea.hbm %s570_s4, 32 }
 0x3ab   :  { %p381_p1 = scmp.ne.s32.totalorder %s570_s4, %s380_s11  ;;  %p384_p2 = scmp.lt.u32.totalorder %s380_s11, %s570_s4 }
 0x3ad   :  { %p386_p3 = pnand %p384_p2, %p381_p1 }
 0x3af   :  { %389 = shalt.err (!%p386_p3)
}
 0x3b0   :  { %256 = dma.vmem_to_hbm [thread:$0]  %s254_s6, 32, %s570_s4, [#allocation9]  }
 0x3b1   :  { %s390_s17 = scalar_lea.vmem %s264_s8, 32  ;;  %p395_p5 = scmp.lt.s32.totalorder %s264_s8, %s264_s8 }
 0x3b2   :  { %p391_p4 = scmp.ne.s32.totalorder %s264_s8, %s390_s17  ;;  %p396_p6 = scmp.lt.s32.totalorder %s390_s17, %s390_s17 }
 0x3b4   :  { %p397_p7 = por %p396_p6, %p395_p5 }
 0x3b6   :  { %p398_p8 = pnand %p397_p7, %p391_p4 }
 0x3b8   :  { %401 = shalt.err (!%p398_p8)
}
 0x3b9   :  { %s402_s1 = scalar_lea.hbm %s571_s5, 32 }
 0x3ba   :  { %p403_p9 = scmp.ne.s32.totalorder %s571_s5, %s402_s1  ;;  %p406_p10 = scmp.lt.u32.totalorder %s402_s1, %s571_s5 }
 0x3bc   :  { %p408_p11 = pnand %p406_p10, %p403_p9 }
 0x3be   :  { %411 = shalt.err (!%p408_p11)
}
 0x3bf   :  { %266 = dma.vmem_to_hbm [thread:$0]  %s264_s8, 32, %s571_s5, [#allocation9]  }
 0x3c0   :  { %416 = dma.done.wait [#allocation4], 32  }
 0x3c1   :  { %417 = vsyncadd [#allocation4], 4294967264 }
 0x3c2   :  { %418 = dma.done.wait [#allocation9], 64  }
 0x3c3   :  { %419 = vsyncadd [#allocation9], 4294967232 }
 0x3c4   :  { %276 = vsyncpa [#allocation3], 1 }
 0x3c5   :  { %277 = vsyncpa [#allocation6], 1 }
 0x3c6   :  { %278 = vsyncpa [#allocation4], 1 }
 0x3c7   :  { %279 = vsyncpa [#allocation9], 1 }

</bundles_post_ra>
